<compile_context>
chip_gen: v5e
topology: v5e:2x2
jax: 0.10.0
libtpu: 0.0.40
codegen_flags: <defaults>
</compile_context>

<pallas_src>
import jax
import jax.numpy as jnp
from jax.experimental import pallas as pl
from jax.experimental.pallas import tpu as pltpu

IN_DIM = 11
IN_PAD = 16          # feature pad 11 -> 16 (NOT 128)
HID = 256
OUT_DIM = 4
LANE = 128
SUBLANE = 8
TB_MAX = 1024        # max rows per grid step (safe on v5e scoped VMEM, big enough
                     # to amortize per-step overhead on v6e/v7x)
MIN_SPLIT_B = 64     # above this, force >= 2 (even) blocks so both v7x TCs work


def _round_up(n, m):
    return ((n + m - 1) // m) * m


def _cdiv(a, b):
    return -(-a // b)


# ---------------------------------------------------------------------------
# Pallas kernel: fused 4-layer MLP + lane-dense log_softmax epilogue (one tile)
# ---------------------------------------------------------------------------
def actor_mlp_kernel(x_ref,
                     w1_ref, b1_ref,
                     w2_ref, b2_ref,
                     w3_ref, b3_ref,
                     w4_ref, b4_ref,
                     out_ref):
    x = x_ref[...]                                                    # (TB, 16) bf16

    h = jnp.dot(x, w1_ref[...], preferred_element_type=jnp.float32)
    h = jnp.maximum(h + b1_ref[...], 0.0)                             # (TB, 256) f32

    h = jnp.dot(h.astype(jnp.bfloat16), w2_ref[...],
                preferred_element_type=jnp.float32)
    h = jnp.maximum(h + b2_ref[...], 0.0)

    h = jnp.dot(h.astype(jnp.bfloat16), w3_ref[...],
                preferred_element_type=jnp.float32)
    h = jnp.maximum(h + b3_ref[...], 0.0)

    lg = jnp.dot(h.astype(jnp.bfloat16), w4_ref[...],
                 preferred_element_type=jnp.float32) + b4_ref[...]    # (TB, 128) f32

    # Lane-dense log_softmax: keep the full 128-lane vreg for the reduce/exp.
    # Pad lanes (>= OUT_DIM) MUST be masked to -inf so exp() contributes 0.
    lane = jax.lax.broadcasted_iota(jnp.int32, lg.shape, 1)
    lg_m = jnp.where(lane < OUT_DIM, lg, -jnp.inf)
    m = jnp.max(lg_m, axis=-1, keepdims=True)
    ex = jnp.exp(lg_m - m)
    lse = m + jnp.log(jnp.sum(ex, axis=-1, keepdims=True))

    logits4 = lg_m[:, :OUT_DIM]                                       # (TB, 4)
    out_ref[:, :OUT_DIM] = logits4                                    # logits
    out_ref[:, OUT_DIM:] = logits4 - lse                              # log-probs


# ---------------------------------------------------------------------------
# One-time parameter preparation (padding / bf16 cast hoisted out of forward)
# ---------------------------------------------------------------------------
def prepare_params(params):
    w1, b1, w2, b2, w3, b3, w4, b4 = params
    w1_p = jnp.pad(w1, ((0, IN_PAD - IN_DIM), (0, 0))).astype(jnp.bfloat16)   # (16, 256)
    w2_p = w2.astype(jnp.bfloat16)                                            # (256, 256)
    w3_p = w3.astype(jnp.bfloat16)                                            # (256, 256)
    w4_p = jnp.pad(w4, ((0, 0), (0, LANE - OUT_DIM))).astype(jnp.bfloat16)    # (256, 128)
    b1_p = b1.reshape(1, HID).astype(jnp.float32)
    b2_p = b2.reshape(1, HID).astype(jnp.float32)
    b3_p = b3.reshape(1, HID).astype(jnp.float32)
    b4_p = jnp.pad(b4.reshape(1, OUT_DIM),
                   ((0, 0), (0, LANE - OUT_DIM))).astype(jnp.float32)         # (1, 128)
    return (w1_p, b1_p, w2_p, b2_p, w3_p, b3_p, w4_p, b4_p)


# ---------------------------------------------------------------------------
# Batch tiling: near-equal blocks, >= 2 (even) blocks for non-trivial batches
# ---------------------------------------------------------------------------
def _choose_tiling(B):
    n_blocks = _cdiv(B, TB_MAX)
    if B > MIN_SPLIT_B:
        n_blocks = max(2, n_blocks)
        if n_blocks % 2:
            n_blocks += 1
    TB = _round_up(_cdiv(B, n_blocks), SUBLANE)
    return TB, n_blocks, TB * n_blocks


# ---------------------------------------------------------------------------
# Forward wrapper
# ---------------------------------------------------------------------------
@jax.jit
def actor_forward(x, prep):
    """Returns (logits, log_probs) for input x of shape (B, 11)."""
    w1_p, b1_p, w2_p, b2_p, w3_p, b3_p, w4_p, b4_p = prep

    B = x.shape[0]
    x2 = x.reshape(B, -1).astype(jnp.float32)            # torch.flatten(x, 1)

    TB, n_blocks, B_pad = _choose_tiling(B)
    # single pad (rows -> B_pad, features 11 -> 16), streamed to the kernel in bf16
    x_p = jnp.pad(x2, ((0, B_pad - B),
                       (0, IN_PAD - IN_DIM))).astype(jnp.bfloat16)    # (B_pad, 16)

    row_spec = lambda w: pl.BlockSpec((TB, w), lambda i: (i, 0))
    const_spec = lambda a: pl.BlockSpec(a.shape, lambda i: (0, 0))

    out_pad = pl.pallas_call(
        actor_mlp_kernel,
        out_shape=jax.ShapeDtypeStruct((B_pad, 2 * OUT_DIM), jnp.float32),
        grid=(n_blocks,),
        in_specs=[row_spec(IN_PAD),
                  const_spec(w1_p), const_spec(b1_p),
                  const_spec(w2_p), const_spec(b2_p),
                  const_spec(w3_p), const_spec(b3_p),
                  const_spec(w4_p), const_spec(b4_p)],
        out_specs=row_spec(2 * OUT_DIM),
        compiler_params=pltpu.CompilerParams(
            dimension_semantics=("parallel",)),
    )(x_p, w1_p, b1_p, w2_p, b2_p, w3_p, b3_p, w4_p, b4_p)

    return out_pad[:B, :OUT_DIM], out_pad[:B, OUT_DIM:]


# ---------------------------------------------------------------------------
# Deterministic parameter init (mimics nn.Linear default: U(-1/sqrt(fan_in), ..))
# ---------------------------------------------------------------------------
def init_params(key):
    dims = [(IN_DIM, HID), (HID, HID), (HID, HID), (HID, OUT_DIM)]
    params = []
    for (fan_in, fan_out) in dims:
        key, kw, kb = jax.random.split(key, 3)
        bound = 1.0 / jnp.sqrt(fan_in)
        # stored as (in, out) == PyTorch weight.T so the kernel does x @ W
        w = jax.random.uniform(kw, (fan_in, fan_out), jnp.float32, -bound, bound)
        b = jax.random.uniform(kb, (fan_out,), jnp.float32, -bound, bound)
        params += [w, b]
    return tuple(params)


def _reference(x, params):
    """Pure-JAX reference with the same bf16 weight/activation quantization."""
    w1, b1, w2, b2, w3, b3, w4, b4 = params
    q = lambda a: a.astype(jnp.bfloat16).astype(jnp.float32)
    h = jnp.maximum(q(x) @ q(w1) + b1, 0.0)
    h = jnp.maximum(q(h) @ q(w2) + b2, 0.0)
    h = jnp.maximum(q(h) @ q(w3) + b3, 0.0)
    return q(h) @ q(w4) + b4


if __name__ == "__main__":
    key = jax.random.PRNGKey(0)
    pkey, xkey1, xkey2, xkey3 = jax.random.split(key, 4)

    params = init_params(pkey)
    prep = prepare_params(params)

    # --- small batch (latency regime, single block) ------------------------
    B = 2
    x = jax.random.normal(xkey1, (B, IN_DIM), jnp.float32)
    logits, log_probs = jax.block_until_ready(actor_forward(x, prep))

    ref_logits = _reference(x, params)
    ref_logp = jax.nn.log_softmax(ref_logits, axis=-1)
    assert logits.shape == (B, OUT_DIM)
    assert jnp.allclose(logits, ref_logits, atol=1e-3, rtol=1e-3), "logits mismatch"
    assert jnp.allclose(log_probs, ref_logp, atol=1e-3, rtol=1e-3), "log_probs mismatch"
    assert jnp.allclose(jnp.exp(log_probs).sum(-1), 1.0, atol=1e-5)

    # --- mid-size batch: forced 2-block grid (v7x dual-TC path) ------------
    B2 = 1000
    x2 = jax.random.normal(xkey2, (B2, IN_DIM), jnp.float32)
    logits2, logp2 = jax.block_until_ready(actor_forward(x2, prep))
    ref2 = _reference(x2, params)
    assert logits2.shape == (B2, OUT_DIM)
    assert jnp.allclose(logits2, ref2, atol=1e-3, rtol=1e-3), "mid-batch mismatch"
    assert jnp.allclose(logp2, jax.nn.log_softmax(ref2, -1), atol=1e-3, rtol=1e-3)

    # --- larger batch: near-equal multi-block tiling (even #blocks) --------
    B3 = 2500
    x3 = jax.random.normal(xkey3, (B3, IN_DIM), jnp.float32)
    logits3, logp3 = jax.block_until_ready(actor_forward(x3, prep))
    ref3 = _reference(x3, params)
    assert logits3.shape == (B3, OUT_DIM)
    assert jnp.allclose(logits3, ref3, atol=1e-3, rtol=1e-3), "large-batch mismatch"
    assert jnp.allclose(logp3, jax.nn.log_softmax(ref3, -1), atol=1e-3, rtol=1e-3)

    print("KERNEL_OK")
</pallas_src>

<mosaic_0001>
module attributes {stable_mosaic.version = 11 : i64} {
  func.func @actor_mlp_kernel(%arg0: i32, %arg1: memref<8x16xbf16, #tpu.memory_space<vmem>>, %arg2: memref<16x256xbf16, #tpu.memory_space<vmem>>, %arg3: memref<1x256xf32, #tpu.memory_space<vmem>>, %arg4: memref<256x256xbf16, #tpu.memory_space<vmem>>, %arg5: memref<1x256xf32, #tpu.memory_space<vmem>>, %arg6: memref<256x256xbf16, #tpu.memory_space<vmem>>, %arg7: memref<1x256xf32, #tpu.memory_space<vmem>>, %arg8: memref<256x128xbf16, #tpu.memory_space<vmem>>, %arg9: memref<1x128xf32, #tpu.memory_space<vmem>>, %arg10: memref<8x8xf32, #tpu.memory_space<vmem>>) attributes {dimension_semantics = [#tpu.dimension_semantics<parallel>], iteration_bounds = array<i64: 1>, scalar_prefetch = 0 : i64, scratch_operands = 0 : i64, tpu.core_type = #tpu.core_type<tc>, window_params = [{transform_indices = @transform_0, window_bounds = array<i64: 8, 16>}, {pipeline_mode = #tpu.pipeline_mode<synchronous>, transform_indices = @transform_1, window_bounds = array<i64: 16, 256>}, {pipeline_mode = #tpu.pipeline_mode<synchronous>, transform_indices = @transform_2, window_bounds = array<i64: 1, 256>}, {pipeline_mode = #tpu.pipeline_mode<synchronous>, transform_indices = @transform_3, window_bounds = array<i64: 256, 256>}, {pipeline_mode = #tpu.pipeline_mode<synchronous>, transform_indices = @transform_4, window_bounds = array<i64: 1, 256>}, {pipeline_mode = #tpu.pipeline_mode<synchronous>, transform_indices = @transform_5, window_bounds = array<i64: 256, 256>}, {pipeline_mode = #tpu.pipeline_mode<synchronous>, transform_indices = @transform_6, window_bounds = array<i64: 1, 256>}, {pipeline_mode = #tpu.pipeline_mode<synchronous>, transform_indices = @transform_7, window_bounds = array<i64: 256, 128>}, {pipeline_mode = #tpu.pipeline_mode<synchronous>, transform_indices = @transform_8, window_bounds = array<i64: 1, 128>}, {transform_indices = @transform_9, window_bounds = array<i64: 8, 8>}]} {
    %c0 = arith.constant 0 : index
    %c0_0 = arith.constant 0 : index
    %0 = vector.load %arg1[%c0, %c0_0] : memref<8x16xbf16, #tpu.memory_space<vmem>>, vector<8x16xbf16>
    %c0_1 = arith.constant 0 : index
    %c0_2 = arith.constant 0 : index
    %1 = vector.load %arg2[%c0_1, %c0_2] : memref<16x256xbf16, #tpu.memory_space<vmem>>, vector<16x256xbf16>
    %cst = arith.constant dense<0.000000e+00> : vector<8x256xf32>
    %2 = tpu.matmul %0, %1, %cst {dimension_numbers = #tpu.dot_dimension_numbers<[1], [0], [0], [1], [0, 0, 1, 1], [], []>} : vector<8x16xbf16>, vector<16x256xbf16>, vector<8x256xf32> -> vector<8x256xf32>
    %c0_3 = arith.constant 0 : index
    %c0_4 = arith.constant 0 : index
    %3 = vector.load %arg3[%c0_3, %c0_4] : memref<1x256xf32, #tpu.memory_space<vmem>>, vector<1x256xf32>
    %4 = vector.broadcast %3 : vector<1x256xf32> to vector<8x256xf32>
    %5 = arith.addf %2, %4 : vector<8x256xf32>
    %cst_5 = arith.constant 0.000000e+00 : f32
    %6 = vector.broadcast %cst_5 : f32 to vector<8x256xf32>
    %7 = arith.maximumf %5, %6 : vector<8x256xf32>
    %8 = arith.truncf %7 : vector<8x256xf32> to vector<8x256xbf16>
    %c0_6 = arith.constant 0 : index
    %c0_7 = arith.constant 0 : index
    %9 = vector.load %arg4[%c0_6, %c0_7] : memref<256x256xbf16, #tpu.memory_space<vmem>>, vector<256x256xbf16>
    %cst_8 = arith.constant dense<0.000000e+00> : vector<8x256xf32>
    %10 = tpu.matmul %8, %9, %cst_8 {dimension_numbers = #tpu.dot_dimension_numbers<[1], [0], [0], [1], [0, 0, 1, 1], [], []>} : vector<8x256xbf16>, vector<256x256xbf16>, vector<8x256xf32> -> vector<8x256xf32>
    %c0_9 = arith.constant 0 : index
    %c0_10 = arith.constant 0 : index
    %11 = vector.load %arg5[%c0_9, %c0_10] : memref<1x256xf32, #tpu.memory_space<vmem>>, vector<1x256xf32>
    %12 = vector.broadcast %11 : vector<1x256xf32> to vector<8x256xf32>
    %13 = arith.addf %10, %12 : vector<8x256xf32>
    %cst_11 = arith.constant 0.000000e+00 : f32
    %14 = vector.broadcast %cst_11 : f32 to vector<8x256xf32>
    %15 = arith.maximumf %13, %14 : vector<8x256xf32>
    %16 = arith.truncf %15 : vector<8x256xf32> to vector<8x256xbf16>
    %c0_12 = arith.constant 0 : index
    %c0_13 = arith.constant 0 : index
    %17 = vector.load %arg6[%c0_12, %c0_13] : memref<256x256xbf16, #tpu.memory_space<vmem>>, vector<256x256xbf16>
    %cst_14 = arith.constant dense<0.000000e+00> : vector<8x256xf32>
    %18 = tpu.matmul %16, %17, %cst_14 {dimension_numbers = #tpu.dot_dimension_numbers<[1], [0], [0], [1], [0, 0, 1, 1], [], []>} : vector<8x256xbf16>, vector<256x256xbf16>, vector<8x256xf32> -> vector<8x256xf32>
    %c0_15 = arith.constant 0 : index
    %c0_16 = arith.constant 0 : index
    %19 = vector.load %arg7[%c0_15, %c0_16] : memref<1x256xf32, #tpu.memory_space<vmem>>, vector<1x256xf32>
    %20 = vector.broadcast %19 : vector<1x256xf32> to vector<8x256xf32>
    %21 = arith.addf %18, %20 : vector<8x256xf32>
    %cst_17 = arith.constant 0.000000e+00 : f32
    %22 = vector.broadcast %cst_17 : f32 to vector<8x256xf32>
    %23 = arith.maximumf %21, %22 : vector<8x256xf32>
    %24 = arith.truncf %23 : vector<8x256xf32> to vector<8x256xbf16>
    %c0_18 = arith.constant 0 : index
    %c0_19 = arith.constant 0 : index
    %25 = vector.load %arg8[%c0_18, %c0_19] : memref<256x128xbf16, #tpu.memory_space<vmem>>, vector<256x128xbf16>
    %cst_20 = arith.constant dense<0.000000e+00> : vector<8x128xf32>
    %26 = tpu.matmul %24, %25, %cst_20 {dimension_numbers = #tpu.dot_dimension_numbers<[1], [0], [0], [1], [0, 0, 1, 1], [], []>} : vector<8x256xbf16>, vector<256x128xbf16>, vector<8x128xf32> -> vector<8x128xf32>
    %c0_21 = arith.constant 0 : index
    %c0_22 = arith.constant 0 : index
    %27 = vector.load %arg9[%c0_21, %c0_22] : memref<1x128xf32, #tpu.memory_space<vmem>>, vector<1x128xf32>
    %28 = vector.broadcast %27 : vector<1x128xf32> to vector<8x128xf32>
    %29 = arith.addf %26, %28 : vector<8x128xf32>
    %30 = tpu.iota {dimensions = array<i32: 1>} : vector<8x128xi32>
    %c4_i32 = arith.constant 4 : i32
    %31 = vector.broadcast %c4_i32 : i32 to vector<8x128xi32>
    %32 = arith.cmpi slt, %30, %31 : vector<8x128xi32>
    %cst_23 = arith.constant 0xFF800000 : f32
    %33 = vector.broadcast %cst_23 : f32 to vector<8x128xf32>
    %34 = arith.select %32, %29, %33 : vector<8x128xi1>, vector<8x128xf32>
    %cst_24 = arith.constant dense<0xFF800000> : vector<8xf32>
    %35 = vector.multi_reduction <maximumf>, %34, %cst_24 [1] : vector<8x128xf32> to vector<8xf32>
    %36 = vector.shape_cast %35 : vector<8xf32> to vector<8x1xf32>
    %37 = vector.broadcast %36 : vector<8x1xf32> to vector<8x128xf32>
    %38 = arith.subf %34, %37 : vector<8x128xf32>
    %39 = math.exp %38 : vector<8x128xf32>
    %cst_25 = arith.constant dense<0.000000e+00> : vector<8xf32>
    %40 = vector.multi_reduction <add>, %39, %cst_25 [1] : vector<8x128xf32> to vector<8xf32>
    %41 = vector.shape_cast %40 : vector<8xf32> to vector<8x1xf32>
    %42 = math.log %41 : vector<8x1xf32>
    %43 = arith.addf %36, %42 : vector<8x1xf32>
    %44 = vector.extract_strided_slice %34 {offsets = [0, 0], sizes = [8, 4], strides = [1, 1]} : vector<8x128xf32> to vector<8x4xf32>
    %c0_26 = arith.constant 0 : index
    %c0_27 = arith.constant 0 : index
    %45 = vector.load %arg10[%c0_26, %c0_27] : memref<8x8xf32, #tpu.memory_space<vmem>>, vector<8x4xf32>
    tpu.vector_store %arg10[%c0_26, %c0_27], %44 {strides = array<i32>} : memref<8x8xf32, #tpu.memory_space<vmem>>, vector<8x4xf32>,
    %46 = vector.broadcast %43 : vector<8x1xf32> to vector<8x4xf32>
    %47 = arith.subf %44, %46 : vector<8x4xf32>
    %c0_28 = arith.constant 0 : index
    %c4 = arith.constant 4 : index
    %48 = vector.load %arg10[%c0_28, %c4] : memref<8x8xf32, #tpu.memory_space<vmem>>, vector<8x4xf32>
    tpu.vector_store %arg10[%c0_28, %c4], %47 {strides = array<i32>} : memref<8x8xf32, #tpu.memory_space<vmem>>, vector<8x4xf32>,
    return
  }
  func.func @transform_0(%arg0: i32) -> (i32, i32) {
    %c0_i32 = arith.constant 0 : i32
    %c0_i32_0 = arith.constant 0 : i32
    return %arg0, %c0_i32 : i32, i32
  }
  func.func @transform_1(%arg0: i32) -> (i32, i32) {
    %c0_i32 = arith.constant 0 : i32
    %c0_i32_0 = arith.constant 0 : i32
    %c0_i32_1 = arith.constant 0 : i32
    return %c0_i32, %c0_i32_0 : i32, i32
  }
  func.func @transform_2(%arg0: i32) -> (i32, i32) {
    %c0_i32 = arith.constant 0 : i32
    %c0_i32_0 = arith.constant 0 : i32
    %c0_i32_1 = arith.constant 0 : i32
    return %c0_i32, %c0_i32_0 : i32, i32
  }
  func.func @transform_3(%arg0: i32) -> (i32, i32) {
    %c0_i32 = arith.constant 0 : i32
    %c0_i32_0 = arith.constant 0 : i32
    %c0_i32_1 = arith.constant 0 : i32
    return %c0_i32, %c0_i32_0 : i32, i32
  }
  func.func @transform_4(%arg0: i32) -> (i32, i32) {
    %c0_i32 = arith.constant 0 : i32
    %c0_i32_0 = arith.constant 0 : i32
    %c0_i32_1 = arith.constant 0 : i32
    return %c0_i32, %c0_i32_0 : i32, i32
  }
  func.func @transform_5(%arg0: i32) -> (i32, i32) {
    %c0_i32 = arith.constant 0 : i32
    %c0_i32_0 = arith.constant 0 : i32
    %c0_i32_1 = arith.constant 0 : i32
    return %c0_i32, %c0_i32_0 : i32, i32
  }
  func.func @transform_6(%arg0: i32) -> (i32, i32) {
    %c0_i32 = arith.constant 0 : i32
    %c0_i32_0 = arith.constant 0 : i32
    %c0_i32_1 = arith.constant 0 : i32
    return %c0_i32, %c0_i32_0 : i32, i32
  }
  func.func @transform_7(%arg0: i32) -> (i32, i32) {
    %c0_i32 = arith.constant 0 : i32
    %c0_i32_0 = arith.constant 0 : i32
    %c0_i32_1 = arith.constant 0 : i32
    return %c0_i32, %c0_i32_0 : i32, i32
  }
  func.func @transform_8(%arg0: i32) -> (i32, i32) {
    %c0_i32 = arith.constant 0 : i32
    %c0_i32_0 = arith.constant 0 : i32
    %c0_i32_1 = arith.constant 0 : i32
    return %c0_i32, %c0_i32_0 : i32, i32
  }
  func.func @transform_9(%arg0: i32) -> (i32, i32) {
    %c0_i32 = arith.constant 0 : i32
    %c0_i32_0 = arith.constant 0 : i32
    return %arg0, %c0_i32 : i32, i32
  }
}

</mosaic_0001>

<bundles_post_ra>
// kernel: actor_forward.1
= control target key start
LH: loop header
LB: loop body
LE: loop exit
PB: predicated region body
PF: predicated region fallthrough
CT: control target
= control target key end

     0   :  { %14 = vsyncpa [#allocation3], 0  ;;  %s1467_s0 = inlined_call_operand.vmem [shape: bf16[8,16], index: 0, kind: input, shape index: {}]   ;;  %s1468_s1 = inlined_call_operand.hbm [shape: bf16[16,256], index: 1, kind: input, shape index: {}]   ;;  %s1469_s2 = inlined_call_operand.vmem [shape: f32[1,256], index: 2, kind: input, shape index: {}]   ;;  %s1470_s3 = inlined_call_operand.hbm [shape: bf16[256,256], index: 3, kind: input, shape index: {}]   ;;  %s1471_s4 = inlined_call_operand.vmem [shape: f32[1,256], index: 4, kind: input, shape index: {}]   ;;  %s1472_s5 = inlined_call_operand.hbm [shape: bf16[256,256], index: 5, kind: input, shape index: {}]   ;;  %s1473_s6 = inlined_call_operand.vmem [shape: f32[1,256], index: 6, kind: input, shape index: {}]   ;;  %s1474_s7 = inlined_call_operand.hbm [shape: bf16[256,128], index: 7, kind: input, shape index: {}]   ;;  %s1475_s8 = inlined_call_operand.vmem [shape: f32[1,128], index: 8, kind: input, shape index: {}]   ;;  %s1476_s9 = inlined_call_operand.vmem [shape: f32[8,8], index: 9, kind: output, shape index: {}]  }
   0x1   :  { %15 = vsyncpa [#allocation5], 0 }
   0x2   :  { %16 = vsyncpa [#allocation8], 0  ;;  %s38_s11 = sshll.u32 %s1470_s3, 4  ;;  %s1372_s12 = smov [#allocation4]   ;;  %s39_s11 = int_to_ptr.hbm [resolvable:$true] %s38_s11 }
   0x3   :  { %s40_s13 = sshll.u32 %s1372_s12, 4  ;;  %s23_s16 = sshll.u32 %s1468_s1, 4  ;;  %s41_s13 = int_to_ptr.vmem [resolvable:$true] %s40_s13  ;;  %s24_s16 = int_to_ptr.hbm [resolvable:$true] %s23_s16 }
   0x4   :  { %s1373_s17 = smov 128   ;;  %s1374_s18 = smov 8  }
   0x5   :  { %46 = dma.hbm_to_vmem [thread:$0]  %s39_s11, 4096, %s41_s13, [#allocation5], %s1373_s17, %s1373_s17, %s1374_s18  }
   0x6   :  { %s1375_s19 = smov [#allocation2]   ;;  %s53_s23 = sshll.u32 %s1472_s5, 4  ;;  %s54_s23 = int_to_ptr.hbm [resolvable:$true] %s53_s23 }
   0x7   :  { %s25_s20 = sshll.u32 %s1375_s19, 4  ;;  %s68_s25 = sshll.u32 %s1474_s7, 4  ;;  %s26_s20 = int_to_ptr.vmem [resolvable:$true] %s25_s20  ;;  %s69_s25 = int_to_ptr.hbm [resolvable:$true] %s68_s25 }
   0x8   :  { %31 = dma.hbm_to_vmem [thread:$0]  %s24_s16, 256, %s26_s20, [#allocation3], %s1373_s17, %s1373_s17, %s1374_s18  }
   0x9   :  { %s1376_s26 = smov [#allocation6]   ;;  %s1377_s1 = smov [#allocation7]  }
   0xa   :  { %s55_s27 = sshll.u32 %s1376_s26, 4  ;;  %s70_s28 = sshll.u32 %s1377_s1, 4  ;;  %s56_s27 = int_to_ptr.vmem [resolvable:$true] %s55_s27  ;;  %s71_s28 = int_to_ptr.vmem [resolvable:$true] %s70_s28 }
   0xb   :  { %61 = dma.hbm_to_vmem [thread:$0]  %s54_s23, 4096, %s56_s27, [#allocation5], %s1373_s17, %s1373_s17, %s1374_s18  }
   0xc   :  { %s1378_s29 = smov 64   ;;  %s1379_s30 = smov 4  }
   0xd   :  { %76 = dma.hbm_to_vmem [thread:$0]  %s69_s25, 2048, %s71_s28, [#allocation8], %s1378_s29, %s1378_s29, %s1379_s30  }
   0xe   :  { %1366 = dma.done.wait [#allocation3], 256  }
   0xf   :  { %1367 = vsyncadd [#allocation3], 4294967040 }
  0x10   :  { %1368 = dma.done.wait [#allocation5], 8192  }
  0x11   :  { %1369 = vsyncadd [#allocation5], 4294959104 }
  0x12   :  { %1370 = dma.done.wait [#allocation8], 2048  }
  0x13   :  { %1371 = vsyncadd [#allocation8], 4294965248  ;;  %vm115_vm0 = vcmask 130048   ;;  %v847_v0 = vld [vmem:[#allocation2] sm:$0xf]  ;;  %vm829_vm2 = vcmask 31744  }
  0x14   :  { %v1176_v1 = vld [vmem:[#allocation2 + $0x4] sm:$0xf0]  ;;  %v1175_v2 = vld [vmem:[#allocation2 + $0x4] sm:$0xf]  ;;  %v849_v4 = vld [vmem:[#allocation2 + $0x8] sm:$0xf0] }
  0x15   :  { %v848_v3 = vor.u32 %v1176_v1, %v847_v0  ;;  %v96_v5 = vld [vmem:[%s1467_s0] sm:$0xf]  ;;  %v852_v7 = vor.u32 %v1175_v2, %v849_v4  ;;  %v1192_v8 = vld [vmem:[#allocation4 + $0x74] sm:$0xf0]  ;;  %v1191_v13 = vld [vmem:[#allocation4 + $0x74] sm:$0xf] }
  0x16   :  { %v913_v6 = vld [vmem:[#allocation4 + $0x70] sm:$0xf]  ;;  %v1208_v10 = vld [vmem:[#allocation4 + $0xf4] sm:$0xf0]  ;;  %v915_v14 = vld [vmem:[#allocation4 + $0x78] sm:$0xf0] }
  0x17   :  { %v977_v9 = vld [vmem:[#allocation4 + $0xf0] sm:$0xf]  ;;  %126 = vmatpush.bf16.msra.mxu0 %v848_v3  ;;  %v914_v11 = vor.u32 %v1192_v8, %v913_v6  ;;  %v1207_v15 = vld [vmem:[#allocation4 + $0xf4] sm:$0xf]  ;;  %139 = vmatpush.bf16.msra.mxu1 %v852_v7  ;;  %v918_v16 = vor.u32 %v1191_v13, %v915_v14  ;;  %v979_v17 = vld [vmem:[#allocation4 + $0xf8] sm:$0xf0] }
  0x18   :  { %v978_v12 = vor.u32 %v1208_v10, %v977_v9  ;;  %v905_v18 = vld [vmem:[#allocation4 + $0x60] sm:$0xf]  ;;  %v1190_v19 = vld [vmem:[#allocation4 + $0x64] sm:$0xf0]  ;;  %v982_v20 = vor.u32 %v1207_v15, %v979_v17  ;;  %v1189_v24 = vld [vmem:[#allocation4 + $0x64] sm:$0xf] }
  0x19   :  { %347 = vmatpush.bf16.msra.mxu2 %v914_v11  ;;  %v906_v21 = vor.u32 %v1190_v19, %v905_v18  ;;  %v969_v22 = vld [vmem:[#allocation4 + $0xe0] sm:$0xf]  ;;  %v1206_v23 = vld [vmem:[#allocation4 + $0xe4] sm:$0xf0]  ;;  %v907_v26 = vld [vmem:[#allocation4 + $0x68] sm:$0xf0] }
  0x1a   :  { %360 = vmatpush.bf16.msra.mxu3 %v978_v12  ;;  %853 = vmatmul.msk.bf16.vlgmr.msra.gmra.mxu0 %vm115_vm0, %v96_v5  ;;  %v970_v25 = vor.u32 %v1206_v23, %v969_v22  ;;  %v1205_v27 = vld [vmem:[#allocation4 + $0xe4] sm:$0xf]  ;;  %v971_v28 = vld [vmem:[#allocation4 + $0xe8] sm:$0xf0]  ;;  %v910_v29 = vor.u32 %v1189_v24, %v907_v26  ;;  %v897_v30 = vld [vmem:[#allocation4 + $0x50] sm:$0xf] }
  0x1b   :  { %854 = vmatmul.msk.bf16.vlgmr.msra.gmra.mxu1 %vm115_vm0, %v96_v5  ;;  %373 = vmatpush.bf16.msrb.mxu0 %v918_v16  ;;  %v1188_v31 = vld [vmem:[#allocation4 + $0x54] sm:$0xf0]  ;;  %v961_v32 = vld [vmem:[#allocation4 + $0xd0] sm:$0xf]  ;;  %v974_v33 = vor.u32 %v1205_v27, %v971_v28  ;;  %v1187_v35 = vld [vmem:[#allocation4 + $0x54] sm:$0xf] }
  0x1c   :  { %386 = vmatpush.bf16.msrb.mxu1 %v982_v20  ;;  %v1204_v34 = vld [vmem:[#allocation4 + $0xd4] sm:$0xf0]  ;;  %v899_v36 = vld [vmem:[#allocation4 + $0x58] sm:$0xf0]  ;;  %v898_v37 = vor.u32 %v1188_v31, %v897_v30  ;;  %v1203_v39 = vld [vmem:[#allocation4 + $0xd4] sm:$0xf] }
  0x1d   :  { %348 = vmatpush.bf16.msra.mxu2 %v906_v21  ;;  %v962_v38 = vor.u32 %v1204_v34, %v961_v32  ;;  %v963_v40 = vld [vmem:[#allocation4 + $0xd8] sm:$0xf0]  ;;  %v889_v41 = vld [vmem:[#allocation4 + $0x40] sm:$0xf]  ;;  %v1186_v42 = vld [vmem:[#allocation4 + $0x44] sm:$0xf0]  ;;  %v902_v45 = vor.u32 %v1187_v35, %v899_v36 }
  0x1e   :  { %361 = vmatpush.bf16.msra.mxu3 %v970_v25  ;;  %v953_v43 = vld [vmem:[#allocation4 + $0xc0] sm:$0xf]  ;;  %v1202_v44 = vld [vmem:[#allocation4 + $0xc4] sm:$0xf0]  ;;  %v966_v46 = vor.u32 %v1203_v39, %v963_v40  ;;  %v1185_v47 = vld [vmem:[#allocation4 + $0x44] sm:$0xf]  ;;  %v890_v49 = vor.u32 %v1186_v42, %v889_v41 }
  0x1f   :  { %374 = vmatpush.bf16.msrb.mxu0 %v910_v29  ;;  %v891_v48 = vld [vmem:[#allocation4 + $0x48] sm:$0xf0]  ;;  %v954_v50 = vor.u32 %v1202_v44, %v953_v43  ;;  %v1201_v51 = vld [vmem:[#allocation4 + $0xc4] sm:$0xf]  ;;  %v881_v53 = vld [vmem:[#allocation4 + $0x30] sm:$0xf] }
  0x20   :  { %387 = vmatpush.bf16.msrb.mxu1 %v974_v33  ;;  %v955_v52 = vld [vmem:[#allocation4 + $0xc8] sm:$0xf0]  ;;  %v1184_v54 = vld [vmem:[#allocation4 + $0x34] sm:$0xf0]  ;;  %v945_v55 = vld [vmem:[#allocation4 + $0xb0] sm:$0xf]  ;;  %v894_v57 = vor.u32 %v1185_v47, %v891_v48 }
  0x21   :  { %349 = vmatpush.bf16.msra.mxu2 %v898_v37  ;;  %v1200_v56 = vld [vmem:[#allocation4 + $0xb4] sm:$0xf0]  ;;  %v958_v58 = vor.u32 %v1201_v51, %v955_v52  ;;  %v1183_v59 = vld [vmem:[#allocation4 + $0x34] sm:$0xf]  ;;  %v883_v60 = vld [vmem:[#allocation4 + $0x38] sm:$0xf0]  ;;  %v882_v62 = vor.u32 %v1184_v54, %v881_v53 }
  0x22   :  { %362 = vmatpush.bf16.msra.mxu3 %v962_v38  ;;  %v1199_v61 = vld [vmem:[#allocation4 + $0xb4] sm:$0xf]  ;;  %v946_v63 = vor.u32 %v1200_v56, %v945_v55  ;;  %v947_v0 = vld [vmem:[#allocation4 + $0xb8] sm:$0xf0]  ;;  %v873_v1 = vld [vmem:[#allocation4 + $0x20] sm:$0xf]  ;;  %v886_v5 = vor.u32 %v1183_v59, %v883_v60 }
  0x23   :  { %375 = vmatpush.bf16.msrb.mxu0 %v902_v45  ;;  %v1182_v2 = vld [vmem:[#allocation4 + $0x24] sm:$0xf0]  ;;  %v937_v3 = vld [vmem:[#allocation4 + $0xa0] sm:$0xf]  ;;  %v950_v6 = vor.u32 %v1199_v61, %v947_v0  ;;  %v1181_v7 = vld [vmem:[#allocation4 + $0x24] sm:$0xf] }
  0x24   :  { %388 = vmatpush.bf16.msrb.mxu1 %v966_v46  ;;  %v1198_v4 = vld [vmem:[#allocation4 + $0xa4] sm:$0xf0]  ;;  %v875_v8 = vld [vmem:[#allocation4 + $0x28] sm:$0xf0]  ;;  %v874_v9 = vor.u32 %v1182_v2, %v873_v1  ;;  %v1197_v11 = vld [vmem:[#allocation4 + $0xa4] sm:$0xf] }
  0x25   :  { %350 = vmatpush.bf16.msra.mxu2 %v890_v49  ;;  %v938_v10 = vor.u32 %v1198_v4, %v937_v3  ;;  %v939_v12 = vld [vmem:[#allocation4 + $0xa8] sm:$0xf0]  ;;  %v878_v13 = vor.u32 %v1181_v7, %v875_v8  ;;  %v865_v15 = vld [vmem:[#allocation4 + $0x10] sm:$0xf]  ;;  %v1180_v16 = vld [vmem:[#allocation4 + $0x14] sm:$0xf0] }
  0x26   :  { %363 = vmatpush.bf16.msra.mxu3 %v954_v50  ;;  %v942_v14 = vor.u32 %v1197_v11, %v939_v12  ;;  %v929_v17 = vld [vmem:[#allocation4 + $0x90] sm:$0xf]  ;;  %v866_v18 = vor.u32 %v1180_v16, %v865_v15  ;;  %v1196_v19 = vld [vmem:[#allocation4 + $0x94] sm:$0xf0]  ;;  %v1179_v20 = vld [vmem:[#allocation4 + $0x14] sm:$0xf] }
  0x27   :  { %376 = vmatpush.bf16.msrb.mxu0 %v894_v57  ;;  %v867_v21 = vld [vmem:[#allocation4 + $0x18] sm:$0xf0]  ;;  %v930_v22 = vor.u32 %v1196_v19, %v929_v17  ;;  %v1195_v24 = vld [vmem:[#allocation4 + $0x94] sm:$0xf]  ;;  %v857_v27 = vld [vmem:[#allocation4] sm:$0xf] }
  0x28   :  { %389 = vmatpush.bf16.msrb.mxu1 %v958_v58  ;;  %v870_v23 = vor.u32 %v1179_v20, %v867_v21  ;;  %v931_v25 = vld [vmem:[#allocation4 + $0x98] sm:$0xf0]  ;;  %v1178_v28 = vld [vmem:[#allocation4 + $0x4] sm:$0xf0]  ;;  %v921_v29 = vld [vmem:[#allocation4 + $0x80] sm:$0xf] }
  0x29   :  { %351 = vmatpush.bf16.msra.mxu2 %v882_v62  ;;  %v934_v26 = vor.u32 %v1195_v24, %v931_v25  ;;  %v858_v30 = vor.u32 %v1178_v28, %v857_v27  ;;  %v1194_v31 = vld [vmem:[#allocation4 + $0x84] sm:$0xf0]  ;;  %v1177_v32 = vld [vmem:[#allocation4 + $0x4] sm:$0xf]  ;;  %v859_v33 = vld [vmem:[#allocation4 + $0x8] sm:$0xf0] }
  0x2a   :  { %364 = vmatpush.bf16.msra.mxu3 %v946_v63  ;;  %v922_v34 = vor.u32 %v1194_v31, %v921_v29  ;;  %v862_v35 = vor.u32 %v1177_v32, %v859_v33  ;;  %v1193_v36 = vld [vmem:[#allocation4 + $0x84] sm:$0xf]  ;;  %v923_v37 = vld [vmem:[#allocation4 + $0x88] sm:$0xf0]  ;;  %v1105_v39 = vld [vmem:[#allocation6 + $0xf0] sm:$0xf] }
  0x2b   :  { %377 = vmatpush.bf16.msrb.mxu0 %v886_v5  ;;  %v926_v38 = vor.u32 %v1193_v36, %v923_v37  ;;  %v1240_v40 = vld [vmem:[#allocation6 + $0xf4] sm:$0xf0]  ;;  %v1239_v41 = vld [vmem:[#allocation6 + $0xf4] sm:$0xf]  ;;  %v1107_v43 = vld [vmem:[#allocation6 + $0xf8] sm:$0xf0] }
  0x2c   :  { %390 = vmatpush.bf16.msrb.mxu1 %v950_v6  ;;  %v1106_v42 = vor.u32 %v1240_v40, %v1105_v39  ;;  %v1097_v44 = vld [vmem:[#allocation6 + $0xe0] sm:$0xf]  ;;  %v1238_v45 = vld [vmem:[#allocation6 + $0xe4] sm:$0xf0]  ;;  %v1110_v46 = vor.u32 %v1239_v41, %v1107_v43  ;;  %v1237_v47 = vld [vmem:[#allocation6 + $0xe4] sm:$0xf] }
  0x2d   :  { %352 = vmatpush.bf16.msra.mxu2 %v874_v9  ;;  %v1099_v48 = vld [vmem:[#allocation6 + $0xe8] sm:$0xf0]  ;;  %v1041_v49 = vld [vmem:[#allocation6 + $0x70] sm:$0xf]  ;;  %v1098_v50 = vor.u32 %v1238_v45, %v1097_v44  ;;  %v1224_v51 = vld [vmem:[#allocation6 + $0x74] sm:$0xf0] }
  0x2e   :  { %365 = vmatpush.bf16.msra.mxu3 %v938_v10  ;;  %v1223_v52 = vld [vmem:[#allocation6 + $0x74] sm:$0xf]  ;;  %v1043_v53 = vld [vmem:[#allocation6 + $0x78] sm:$0xf0]  ;;  %v1102_v54 = vor.u32 %v1237_v47, %v1099_v48  ;;  %v1042_v55 = vor.u32 %v1224_v51, %v1041_v49  ;;  %v1089_v57 = vld [vmem:[#allocation6 + $0xd0] sm:$0xf] }
  0x2f   :  { %378 = vmatpush.bf16.msrb.mxu0 %v878_v13  ;;  %v1046_v56 = vor.u32 %v1223_v52, %v1043_v53  ;;  %v1236_v58 = vld [vmem:[#allocation6 + $0xd4] sm:$0xf0]  ;;  %v1235_v59 = vld [vmem:[#allocation6 + $0xd4] sm:$0xf]  ;;  %v1091_v60 = vld [vmem:[#allocation6 + $0xd8] sm:$0xf0] }
  0x30   :  { %391 = vmatpush.bf16.msrb.mxu1 %v942_v14  ;;  %v1033_v61 = vld [vmem:[#allocation6 + $0x60] sm:$0xf]  ;;  %v1222_v62 = vld [vmem:[#allocation6 + $0x64] sm:$0xf0]  ;;  %v1221_v0 = vld [vmem:[#allocation6 + $0x64] sm:$0xf]  ;;  %v1090_v2 = vor.u32 %v1236_v58, %v1089_v57  ;;  %v1094_v6 = vor.u32 %v1235_v59, %v1091_v60 }
  0x31   :  { %353 = vmatpush.bf16.msra.mxu2 %v866_v18  ;;  %v1034_v63 = vor.u32 %v1222_v62, %v1033_v61  ;;  %v1035_v1 = vld [vmem:[#allocation6 + $0x68] sm:$0xf0]  ;;  %v1081_v4 = vld [vmem:[#allocation6 + $0xc0] sm:$0xf]  ;;  %v1234_v5 = vld [vmem:[#allocation6 + $0xc4] sm:$0xf0] }
  0x32   :  { %366 = vmatpush.bf16.msra.mxu3 %v930_v22  ;;  %v1038_v3 = vor.u32 %v1221_v0, %v1035_v1  ;;  %v1025_v7 = vld [vmem:[#allocation6 + $0x50] sm:$0xf]  ;;  %v1220_v8 = vld [vmem:[#allocation6 + $0x54] sm:$0xf0]  ;;  %v1219_v9 = vld [vmem:[#allocation6 + $0x54] sm:$0xf]  ;;  %v1082_v16 = vor.u32 %v1234_v5, %v1081_v4 }
  0x33   :  { %379 = vmatpush.bf16.msrb.mxu0 %v870_v23  ;;  %v1233_v10 = vld [vmem:[#allocation6 + $0xc4] sm:$0xf]  ;;  %v1083_v11 = vld [vmem:[#allocation6 + $0xc8] sm:$0xf0]  ;;  %v1027_v12 = vld [vmem:[#allocation6 + $0x58] sm:$0xf0]  ;;  %v1026_v13 = vor.u32 %v1220_v8, %v1025_v7 }
  0x34   :  { %392 = vmatpush.bf16.msrb.mxu1 %v934_v26  ;;  %v1030_v14 = vor.u32 %v1219_v9, %v1027_v12  ;;  %v1017_v15 = vld [vmem:[#allocation6 + $0x40] sm:$0xf]  ;;  %v1218_v17 = vld [vmem:[#allocation6 + $0x44] sm:$0xf0]  ;;  %v1217_v18 = vld [vmem:[#allocation6 + $0x44] sm:$0xf]  ;;  %v1086_v20 = vor.u32 %v1233_v10, %v1083_v11 }
  0x35   :  { %354 = vmatpush.bf16.msra.mxu2 %v858_v30  ;;  %v1019_v19 = vld [vmem:[#allocation6 + $0x48] sm:$0xf0]  ;;  %v1073_v21 = vld [vmem:[#allocation6 + $0xb0] sm:$0xf]  ;;  %v1232_v22 = vld [vmem:[#allocation6 + $0xb4] sm:$0xf0]  ;;  %v1018_v25 = vor.u32 %v1218_v17, %v1017_v15 }
  0x36   :  { %367 = vmatpush.bf16.msra.mxu3 %v922_v34  ;;  %v1231_v23 = vld [vmem:[#allocation6 + $0xb4] sm:$0xf]  ;;  %v1075_v24 = vld [vmem:[#allocation6 + $0xb8] sm:$0xf0]  ;;  %v1022_v26 = vor.u32 %v1217_v18, %v1019_v19  ;;  %v1074_v27 = vor.u32 %v1232_v22, %v1073_v21  ;;  %v1065_v29 = vld [vmem:[#allocation6 + $0xa0] sm:$0xf] }
  0x37   :  { %380 = vmatpush.bf16.msrb.mxu0 %v862_v35  ;;  %v1078_v28 = vor.u32 %v1231_v23, %v1075_v24  ;;  %v1230_v30 = vld [vmem:[#allocation6 + $0xa4] sm:$0xf0]  ;;  %v99_v31 = vld [vmem:[%s1469_s2] sm:$0x3]  ;;  %v1229_v32 = vld [vmem:[#allocation6 + $0xa4] sm:$0xf] }
  0x38   :  { %393 = vmatpush.bf16.msrb.mxu1 %v926_v38  ;;  %v1067_v33 = vld [vmem:[#allocation6 + $0xa8] sm:$0xf0]  ;;  %v1066_v34 = vor.u32 %v1230_v30, %v1065_v29  ;;  %v101_v35 = vperm.slane %v99_v31, 0  ;;  %v102_v37 = vperm.slane %v99_v31, 1  ;;  %v1009_v48 = vld [vmem:[#allocation6 + $0x30] sm:$0xf] }
  0x39   :  { %601 = vmatpush.bf16.msrb.mxu2 %v1042_v55  ;;  %v1070_v36 = vor.u32 %v1229_v32, %v1067_v33  ;;  %v1216_v49 = vld [vmem:[#allocation6 + $0x34] sm:$0xf0]  ;;  %v1011_v52 = vld [vmem:[#allocation6 + $0x38] sm:$0xf0]  ;;  %v1001_v60 = vld [vmem:[#allocation6 + $0x20] sm:$0xf] }
  0x3a   :  { %614 = vmatpush.bf16.msrb.mxu3 %v1106_v42  ;;  %v1010_v51 = vor.u32 %v1216_v49, %v1009_v48  ;;  %v1228_v55 = vld [vmem:[#allocation6 + $0x94] sm:$0xf0]  ;;  %v1059_v58 = vld [vmem:[#allocation6 + $0x98] sm:$0xf0]  ;;  %v1214_v61 = vld [vmem:[#allocation6 + $0x24] sm:$0xf0] }
  0x3b   :  { %627 = vmatpush.bf16.msra.mxu0 %v1046_v56  ;;  %v1227_v56 = vld [vmem:[#allocation6 + $0x94] sm:$0xf]  ;;  %v1213_v62 = vld [vmem:[#allocation6 + $0x24] sm:$0xf]  ;;  %v1003_v0 = vld [vmem:[#allocation6 + $0x28] sm:$0xf0] }
  0x3c   :  { %640 = vmatpush.bf16.msra.mxu1 %v1110_v46  ;;  %v1062_v59 = vor.u32 %v1227_v56, %v1059_v58  ;;  %v1006_v1 = vor.u32 %v1213_v62, %v1003_v0  ;;  %v1225_v4 = vld [vmem:[#allocation6 + $0x84] sm:$0xf]  ;;  %v993_v8 = vld [vmem:[#allocation6 + $0x10] sm:$0xf]  ;;  %v1212_v9 = vld [vmem:[#allocation6 + $0x14] sm:$0xf0] }
  0x3d   :  { %602 = vmatpush.bf16.msrb.mxu2 %v1034_v63  ;;  %v1002_v63 = vor.u32 %v1214_v61, %v1001_v60  ;;  %v994_v10 = vor.u32 %v1212_v9, %v993_v8  ;;  %v1211_v11 = vld [vmem:[#allocation6 + $0x14] sm:$0xf]  ;;  %v995_v12 = vld [vmem:[#allocation6 + $0x18] sm:$0xf0]  ;;  %v1210_v15 = vld [vmem:[#allocation6 + $0x4] sm:$0xf0] }
  0x3e   :  { %615 = vmatpush.bf16.msrb.mxu3 %v1098_v50  ;;  %v1215_v50 = vld [vmem:[#allocation6 + $0x34] sm:$0xf]  ;;  %v987_v18 = vld [vmem:[#allocation6 + $0x8] sm:$0xf0]  ;;  %v1248_v21 = vld [vmem:[#allocation7 + $0x38] sm:$0xff]  ;;  %vm836_vm3 = vcmask 64544  }
  0x3f   :  { %628 = vmatpush.bf16.msra.mxu0 %v1038_v3  ;;  %v1014_v53 = vor.u32 %v1215_v50, %v1011_v52  ;;  %v1226_v3 = vld [vmem:[#allocation6 + $0x84] sm:$0xf0]  ;;  %v1255_v22 = vld [vmem:[#allocation7 + $0x70] sm:$0xff]  ;;  %v1244_v49 = vld [vmem:[#allocation7 + $0x18] sm:$0xff] }
  0x40   :  { %641 = vmatpush.bf16.msra.mxu1 %v1102_v54  ;;  %v1057_v54 = vld [vmem:[#allocation6 + $0x90] sm:$0xf]  ;;  %v1254_v24 = vld [vmem:[#allocation7 + $0x68] sm:$0xff]  ;;  %v1249_v52 = vld [vmem:[#allocation7 + $0x40] sm:$0xff] }
  0x41   :  { %603 = vmatpush.bf16.msrb.mxu2 %v1026_v13  ;;  %v1058_v57 = vor.u32 %v1228_v55, %v1057_v54  ;;  %v998_v13 = vor.u32 %v1211_v11, %v995_v12  ;;  %v1247_v23 = vld [vmem:[#allocation7 + $0x30] sm:$0xff]  ;;  %v1250_v50 = vld [vmem:[#allocation7 + $0x48] sm:$0xff]  ;;  %v1241_v54 = vld [vmem:[#allocation7] sm:$0xff]  ;;  %v815_v11 = vlaneseq }
  0x42   :  { %616 = vmatpush.bf16.msrb.mxu3 %v1090_v2  ;;  %v1049_v2 = vld [vmem:[#allocation6 + $0x80] sm:$0xf]  ;;  %v1251_v48 = vld [vmem:[#allocation7 + $0x50] sm:$0xff] }
  0x43   :  { %629 = vmatpush.bf16.msra.mxu0 %v1030_v14  ;;  %v1050_v5 = vor.u32 %v1226_v3, %v1049_v2  ;;  %v985_v14 = vld [vmem:[#allocation6] sm:$0xf]  ;;  %v435_v56 = vld [vmem:[%s1473_s6] sm:$0x3] }
  0x44   :  { %642 = vmatpush.bf16.msra.mxu1 %v1094_v6  ;;  %v1051_v6 = vld [vmem:[#allocation6 + $0x88] sm:$0xf0]  ;;  %v986_v17 = vor.u32 %v1210_v15, %v985_v14  ;;  %v1265_v12 = vld [vmem:[%s1475_s8] ss:$0 sm:$0xff] }
  0x45   :  { %604 = vmatpush.bf16.msrb.mxu2 %v1018_v25  ;;  %v1054_v7 = vor.u32 %v1225_v4, %v1051_v6  ;;  %v1246_v25 = vld [vmem:[#allocation7 + $0x28] sm:$0xff] }
  0x46   :  { %617 = vmatpush.bf16.msrb.mxu3 %v1082_v16  ;;  %v1209_v16 = vld [vmem:[#allocation6 + $0x4] sm:$0xf] }
  0x47   :  { %630 = vmatpush.bf16.msra.mxu0 %v1022_v26  ;;  %v990_v19 = vor.u32 %v1209_v16, %v987_v18  ;;  %v1253_v26 = vld [vmem:[#allocation7 + $0x60] sm:$0xff] }
  0x48   :  { %643 = vmatpush.bf16.msra.mxu1 %v1086_v20  ;;  %v1256_v20 = vld [vmem:[#allocation7 + $0x78] sm:$0xff] }
  0x49   :  { %605 = vmatpush.bf16.msrb.mxu2 %v1010_v51  ;;  %v1243_v51 = vld [vmem:[#allocation7 + $0x10] sm:$0xff] }
  0x4a   :  { %618 = vmatpush.bf16.msrb.mxu3 %v1074_v27  ;;  %v181_v27 = vld [vmem:[%s1471_s4] sm:$0x3] }
  0x4b   :  { %631 = vmatpush.bf16.msra.mxu0 %v1014_v53  ;;  %v183_v33 = vperm.slane %v181_v27, 0  ;;  %v1242_v53 = vld [vmem:[#allocation7 + $0x8] sm:$0xff] }
  0x4c   :  { %644 = vmatpush.bf16.msra.mxu1 %v1078_v28  ;;  %v184_v28 = vperm.slane %v181_v27, 1 }
  0x4d   :  { %606 = vmatpush.bf16.msrb.mxu2 %v1002_v63  ;;  %v437_v63 = vperm.slane %v435_v56, 0 }
  0x4e   :  { %619 = vmatpush.bf16.msrb.mxu3 %v1066_v34 }
  0x4f   :  { %632 = vmatpush.bf16.msra.mxu0 %v1006_v1 }
  0x50   :  { %645 = vmatpush.bf16.msra.mxu1 %v1070_v36 }
  0x51   :  { %607 = vmatpush.bf16.msrb.mxu2 %v994_v10 }
  0x52   :  { %620 = vmatpush.bf16.msrb.mxu3 %v1058_v57  ;;  %v438_v57 = vperm.slane %v435_v56, 1 }
  0x53   :  { %633 = vmatpush.bf16.msra.mxu0 %v998_v13  ;;  %v816_v13 = vand.u32 127, %v815_v11 }
  0x54   :  { %646 = vmatpush.bf16.msra.mxu1 %v1062_v59 }
  0x55   :  { %608 = vmatpush.bf16.msrb.mxu2 %v986_v17  ;;  %vm817_vm1 = vcmp.lt.s32.totalorder %v816_v13, 4 }
  0x56   :  { %621 = vmatpush.bf16.msrb.mxu3 %v1050_v5 }
  0x57   :  { %634 = vmatpush.bf16.msra.mxu0 %v990_v19 }
  0x58   :  { %647 = vmatpush.bf16.msra.mxu1 %v1054_v7 }
  0x97   :  { %v128_v38 = vpop.f32.mrf.mxu0 }
  0x98   :  { %v129_v39 = vadd.f32 %v128_v38, %v101_v35  ;;  %v141_v40 = vpop.f32.mrf.mxu1 }
  0x99   :  { %v142_v41 = vadd.f32 %v141_v40, %v102_v37 }
  0x9a   :  { %v145_v42 = vmax.f32 %v129_v39, 0.0 }
  0x9b   :  { %v146_v43 = vmax.f32 %v142_v41, 0.0 }
  0x9c   :  { %v147_v44 = vpack.c.bf16 %v145_v42, %v145_v42 }
  0x9d   :  { %v148_v45 = vpack.c.bf16 %v146_v43, %v146_v43 }
  0x9e   :  { %355 = vmatmul.bf16.vlgmr.msra.gmra.mxu2 %v147_v44  ;;  %381 = vmatmul.bf16.vlgmr.msrb.gmra.mxu0 %v147_v44 }
  0x9f   :  { %368 = vmatmul.bf16.vlgmr.msra.gmra.mxu3 %v148_v45  ;;  %394 = vmatmul.bf16.vlgmr.msrb.gmra.mxu1 %v148_v45  ;;  %v130_v46 = vpop.f32.mrf.mxu0 }
  0xa0   :  { %v143_v47 = vpop.f32.mrf.mxu1  ;;  %802 = vmatpush.bf16.msra.mxu3 %v1256_v20  ;;  %789 = vmatpush.bf16.msra.mxu2 %v1248_v21  ;;  %v1252_v46 = vld [vmem:[#allocation7 + $0x58] sm:$0xff] }
  0xa1   :  { %v1245_v47 = vld [vmem:[#allocation7 + $0x20] sm:$0xff] }
  0xa4   :  { %803 = vmatpush.bf16.msra.mxu3 %v1255_v22  ;;  %790 = vmatpush.bf16.msra.mxu2 %v1247_v23 }
  0xa8   :  { %804 = vmatpush.bf16.msra.mxu3 %v1254_v24  ;;  %791 = vmatpush.bf16.msra.mxu2 %v1246_v25 }
  0xac   :  { %805 = vmatpush.bf16.msra.mxu3 %v1253_v26  ;;  %792 = vmatpush.bf16.msra.mxu2 %v1245_v47 }
  0xb0   :  { %806 = vmatpush.bf16.msra.mxu3 %v1252_v46  ;;  %793 = vmatpush.bf16.msra.mxu2 %v1244_v49 }
  0xb4   :  { %807 = vmatpush.bf16.msra.mxu3 %v1251_v48  ;;  %794 = vmatpush.bf16.msra.mxu2 %v1243_v51 }
  0xb8   :  { %808 = vmatpush.bf16.msra.mxu3 %v1250_v50  ;;  %795 = vmatpush.bf16.msra.mxu2 %v1242_v53 }
  0xbc   :  { %809 = vmatpush.bf16.msra.mxu3 %v1249_v52  ;;  %796 = vmatpush.bf16.msra.mxu2 %v1241_v54 }
 0x11b   :  { %v382_v29 = vpop.f32.mrf.mxu0 }
 0x11c   :  { %v383_v30 = vadd.f32 %v382_v29, %v184_v28  ;;  %v395_v31 = vpop.f32.mrf.mxu1 }
 0x11e   :  { %v396_v32 = vadd.f32 %v395_v31, %v383_v30 }
 0x120   :  { %v400_v34 = vmax.f32 %v396_v32, 0.0 }
 0x121   :  { %v356_v35 = vpop.f32.mrf.mxu2 }
 0x122   :  { %v402_v36 = vpack.c.bf16 %v400_v34, %v400_v34  ;;  %v357_v37 = vadd.f32 %v356_v35, %v183_v33  ;;  %v369_v38 = vpop.f32.mrf.mxu3 }
 0x123   :  { %v384_v39 = vpop.f32.mrf.mxu0 }
 0x124   :  { %v370_v40 = vadd.f32 %v369_v38, %v357_v37  ;;  %v397_v41 = vpop.f32.mrf.mxu1  ;;  %622 = vmatmul.bf16.vlgmr.msrb.gmra.mxu3 %v402_v36  ;;  %648 = vmatmul.bf16.vlgmr.msra.gmra.mxu1 %v402_v36 }
 0x126   :  { %v399_v42 = vmax.f32 %v370_v40, 0.0 }
 0x128   :  { %v401_v43 = vpack.c.bf16 %v399_v42, %v399_v42 }
 0x129   :  { %v358_v44 = vpop.f32.mrf.mxu2 }
 0x12a   :  { %v371_v45 = vpop.f32.mrf.mxu3  ;;  %609 = vmatmul.bf16.vlgmr.msrb.gmra.mxu2 %v401_v43  ;;  %635 = vmatmul.bf16.vlgmr.msra.gmra.mxu0 %v401_v43 }
 0x1a1   :  { %v649_v55 = vpop.f32.mrf.mxu1 }
 0x1a7   :  { %v623_v58 = vpop.f32.mrf.mxu3  ;;  %v636_v59 = vpop.f32.mrf.mxu0 }
 0x1a8   :  { %v637_v60 = vadd.f32 %v636_v59, %v438_v57 }
 0x1a9   :  { %v651_v61 = vpop.f32.mrf.mxu1 }
 0x1aa   :  { %v650_v62 = vadd.f32 %v649_v55, %v637_v60 }
 0x1ac   :  { %v654_v0 = vmax.f32 %v650_v62, 0.0 }
 0x1ad   :  { %v610_v1 = vpop.f32.mrf.mxu2 }
 0x1ae   :  { %v656_v2 = vpack.c.bf16 %v654_v0, %v654_v0  ;;  %v611_v3 = vadd.f32 %v610_v1, %v437_v63 }
 0x1af   :  { %v625_v4 = vpop.f32.mrf.mxu3  ;;  %v638_v5 = vpop.f32.mrf.mxu0 }
 0x1b0   :  { %v624_v6 = vadd.f32 %v623_v58, %v611_v3  ;;  %810 = vmatmul.bf16.vlgmr.msra.gmra.mxu3 %v656_v2 }
 0x1b2   :  { %v653_v7 = vmax.f32 %v624_v6, 0.0 }
 0x1b4   :  { %v655_v8 = vpack.c.bf16 %v653_v7, %v653_v7 }
 0x1b5   :  { %v612_v9 = vpop.f32.mrf.mxu2 }
 0x1b6   :  { %797 = vmatmul.bf16.vlgmr.msra.gmra.mxu2 %v655_v8 }
 0x233   :  { %v811_v10 = vpop.f32.mrf.mxu3 }
 0x239   :  { %v798_v14 = vpop.f32.mrf.mxu2 }
 0x23a   :  { %v799_v15 = vadd.f32 %v1265_v12, %v798_v14 }
 0x23b   :  { %v813_v16 = vpop.f32.mrf.mxu3 }
 0x23c   :  { %v812_v17 = vadd.f32 %v811_v10, %v799_v15 }
 0x23e   :  { %v818_v18 = vsel %vm817_vm1, %v812_v17, -inf }
 0x23f   :  { %819 = vmax.xlane.f32.xlu0 %v818_v18  ;;  %830 = vst.msk [vmem:[%s1476_s9] sm:$0xff] %vm829_vm2, %v818_v18 }
 0x241   :  { %v800_v19 = vpop.f32.mrf.mxu2 }
 0x2b2   :  { %v820_v20 = vpop.xlane.xlu0 %819 }
 0x2b3   :  { %v821_v21 = vsub.f32 %v818_v18, %v820_v20 }
 0x2b5   :  { %v822_v22 = vmul.f32 1.442695, %v821_v21 }
 0x2b7   :  { %1266 = vpow2.f32 %v822_v22 }
 0x2bd   :  { %v1267_v23 = vpop.eup %1266 }
 0x2be   :  { %824 = vadd.xlane.f32.xlu0 %v1267_v23 }
 0x331   :  { %v825_v24 = vpop.xlane.xlu0 %824 }
 0x332   :  { %1268 = vlog2.f32 %v825_v24 }
 0x338   :  { %v1269_v25 = vpop.eup %1268 }
 0x339   :  { %v827_v26 = vmul.f32 0.6931472, %v1269_v25 }
 0x33b   :  { %v828_v27 = vadd.f32 %v827_v26, %v820_v20 }
 0x33d   :  { %v831_v28 = vsub.f32 %v818_v18, %v828_v27 }
 0x33f   :  { %833 = vrot.lane.b32.xlu1 %v831_v28, %s1379_s30 }
 0x3b1   :  { %v834_v29 = vpop.permute.xlu1 %833 }
 0x3b2   :  { %837 = vst.msk [vmem:[%s1476_s9] sm:$0xff] %vm836_vm3, %v834_v29 }
 0x3b3   :  { %842 = vsyncpa [#allocation3], 1 }
 0x3b4   :  { %843 = vsyncpa [#allocation5], 1 }
 0x3b5   :  { %844 = vsyncpa [#allocation8], 1 }

</bundles_post_ra>
